<compile_context>
chip_gen: v6e
topology: v6e:2x2x1
jax: 0.10.0
libtpu: 0.0.40
codegen_flags: <defaults>
</compile_context>

<pallas_src>
import functools

import jax
import jax.numpy as jnp
from jax import lax
from jax.experimental import pallas as pl
from jax.experimental.pallas import tpu as pltpu

BN_EPS = 1e-5


# ----------------------------------------------------------------------------
# Fused kernel: node decoder + edge predictor for one (i-block, j-block) tile.
# Grid: (n_pad // bi, n_pad // bj); j (last axis) iterates fastest.
# ----------------------------------------------------------------------------
def graph_decoder_kernel(xi_ref, xj_ref,
                         nw1_ref, nb1_ref, nw2_ref, nb2_ref,
                         ew1a_ref, ew1b_ref, eb1_ref,
                         ew2_ref, eb2_ref, ew3_ref, eb3_ref,
                         node_out_ref, edge_out_ref):
    bi = xi_ref.shape[0]
    bj = xj_ref.shape[0]
    hdim = ew2_ref.shape[0]
    c = ew3_ref.shape[1]

    xi = xi_ref[...]                                                     # [bi, E]

    # ---- node decoder for this i-block: only on the first j step of each i ----
    @pl.when(pl.program_id(1) == 0)
    def _():
        hn = jnp.maximum(
            jnp.dot(xi, nw1_ref[...], preferred_element_type=jnp.float32)
            + nb1_ref[...], 0.0)
        # TODO(synk): Dropout is identity (eval mode); stochastic training mask omitted.
        node_out_ref[...] = (
            jnp.dot(hn, nw2_ref[...], preferred_element_type=jnp.float32)
            + nb2_ref[...])

    # ---- edge predictor ----
    # cat([x_i, x_j]) @ W1 + b1  ==  (x_i @ W1[:E]) + (x_j @ W1[E:] + b1)
    a_i = jnp.dot(xi, ew1a_ref[...], preferred_element_type=jnp.float32)   # [bi, H]
    xb = (jnp.dot(xj_ref[...], ew1b_ref[...], preferred_element_type=jnp.float32)
          + eb1_ref[...])                                                  # [bj, H]
    h1 = jnp.maximum(a_i[:, None, :] + xb[None, :, :], 0.0)                # [bi, bj, H]
    # bj % 8 == 0, so collapsing (bi, bj) into the sublane axis is a free relayout.
    h1 = h1.reshape(bi * bj, hdim)
    h2 = jnp.maximum(
        jnp.dot(h1, ew2_ref[...], preferred_element_type=jnp.float32) + eb2_ref[...],
        0.0)                                                               # [bi*bj, H]
    out = (jnp.dot(h2, ew3_ref[...], preferred_element_type=jnp.float32)
           + eb3_ref[...])                                                 # [bi*bj, C]
    # Splitting (bi*bj) back into (bi, bj) is again a free relayout (bj % 8 == 0).
    edge_out_ref[...] = out.reshape(bi, bj, c)


# ----------------------------------------------------------------------------
# Parameter construction (mirrors nn.Linear / nn.BatchNorm1d init) + BN folding
# ----------------------------------------------------------------------------
def _linear_params(key, fan_in, fan_out):
    bound = 1.0 / (fan_in ** 0.5)
    kw, kb = jax.random.split(key)
    w = jax.random.uniform(kw, (fan_in, fan_out), jnp.float32, -bound, bound)
    b = jax.random.uniform(kb, (1, fan_out), jnp.float32, -bound, bound)
    return w, b


def _bn_params(h):
    # PyTorch BatchNorm1d defaults: weight=1, bias=0, running_mean=0, running_var=1
    return (jnp.ones((1, h), jnp.float32), jnp.zeros((1, h), jnp.float32),
            jnp.zeros((1, h), jnp.float32), jnp.ones((1, h), jnp.float32))


def init_graph_decoder_params(key, embedding_dim, hidden_channels, feature_dim, edge_dim):
    ks = jax.random.split(key, 5)
    nw1, nb1 = _linear_params(ks[0], embedding_dim, hidden_channels)
    nbn1 = _bn_params(hidden_channels)
    nw2, nb2 = _linear_params(ks[1], hidden_channels, feature_dim)
    ew1, eb1 = _linear_params(ks[2], 2 * embedding_dim, hidden_channels)
    ebn1 = _bn_params(hidden_channels)
    ew2, eb2 = _linear_params(ks[3], hidden_channels, hidden_channels)
    ebn2 = _bn_params(hidden_channels)
    ew3, eb3 = _linear_params(ks[4], hidden_channels, 1 + edge_dim)
    return dict(node=(nw1, nb1, *nbn1, nw2, nb2),
                edge=(ew1, eb1, *ebn1, ew2, eb2, *ebn2, ew3, eb3))


def _fold_bn_into_linear(w, b, gamma, beta, mean, var):
    # eval-mode BN(Wx + b) == (W*s) x + ((b-mean)*s + beta),  s = gamma*rsqrt(var+eps)
    s = gamma * lax.rsqrt(var + BN_EPS)
    return w * s, (b - mean) * s + beta


def prepare_graph_decoder_params(raw, embedding_dim):
    """Fold BN into Linears and split the edge first layer across the concat."""
    nw1, nb1, ng, nbe, nm, nv, nw2, nb2 = raw["node"]
    nw1f, nb1f = _fold_bn_into_linear(nw1, nb1, ng, nbe, nm, nv)

    (ew1, eb1, eg1, ebe1, em1, ev1,
     ew2, eb2, eg2, ebe2, em2, ev2, ew3, eb3) = raw["edge"]
    ew1f, eb1f = _fold_bn_into_linear(ew1, eb1, eg1, ebe1, em1, ev1)
    ew2f, eb2f = _fold_bn_into_linear(ew2, eb2, eg2, ebe2, em2, ev2)

    return dict(nw1=nw1f, nb1=nb1f, nw2=nw2, nb2=nb2,
                ew1a=ew1f[:embedding_dim], ew1b=ew1f[embedding_dim:], eb1=eb1f,
                ew2=ew2f, eb2=eb2f, ew3=ew3, eb3=eb3)


# ----------------------------------------------------------------------------
# VMEM-aware block sizing (review #2/#3/#7)
# ----------------------------------------------------------------------------
def _pick_blocks(n_pad, vmem_budget_bytes=24 * 1024 * 1024):
    """Pick (bi, bj) node-block sizes for the 2-D grid.

    Per pair row the dominant f32 VMEM cost (lanes physically padded to 128) is
    ~512 B each for the h1 and h2 intermediates plus ~2*512 B for the
    double-buffered edge-output block -> ~2.5 KiB/pair (with slack).  A 24 MiB
    budget therefore leaves large headroom on v7x (64 MiB physical VMEM) as well
    as v5e/v6e (128 MiB), while still giving blocks big enough that the ~0.35 us
    per-grid-step overhead is amortized.
    """
    fixed = 2 << 20                       # weights, x blocks, node block, headroom
    bytes_per_pair = 5 * 512
    max_pairs = max((vmem_budget_bytes - fixed) // bytes_per_pair, 64)
    if n_pad * n_pad <= max_pairs:
        return n_pad, n_pad               # single grid step
    divs = [d for d in range(8, n_pad + 1, 8) if n_pad % d == 0]
    # Prefer a large j block (longer contiguous HBM rows per DMA chunk).
    bj = max([d for d in divs if 8 * d <= max_pairs], default=8)
    bi = max([d for d in divs if d * bj <= max_pairs], default=8)
    return bi, bj


# ----------------------------------------------------------------------------
# Wrapper (forward pass)
# ----------------------------------------------------------------------------
@functools.partial(jax.jit, static_argnames=("feature_dim", "edge_dim"))
def graph_decoder_forward(node_embeddings, fparams, *, feature_dim, edge_dim):
    n, e = node_embeddings.shape
    c = 1 + edge_dim
    # Pad N up to a multiple of 8 (padded rows are zeros and sliced away below).
    n_pad = max(8, -(-n // 8) * 8)
    x = node_embeddings
    if n_pad != n:
        x = jnp.zeros((n_pad, e), node_embeddings.dtype).at[:n, :].set(node_embeddings)

    bi, bj = _pick_blocks(n_pad)
    grid = (n_pad // bi, n_pad // bj)

    const2d = lambda a: pl.BlockSpec(a.shape, lambda i, j: (0, 0))
    weight_args = (fparams["nw1"], fparams["nb1"], fparams["nw2"], fparams["nb2"],
                   fparams["ew1a"], fparams["ew1b"], fparams["eb1"],
                   fparams["ew2"], fparams["eb2"], fparams["ew3"], fparams["eb3"])

    node_feat, edge_out = pl.pallas_call(
        graph_decoder_kernel,
        grid=grid,
        out_shape=(jax.ShapeDtypeStruct((n_pad, feature_dim), jnp.float32),
                   jax.ShapeDtypeStruct((n_pad, n_pad, c), jnp.float32)),
        in_specs=[pl.BlockSpec((bi, e), lambda i, j: (i, 0)),   # x_i block
                  pl.BlockSpec((bj, e), lambda i, j: (j, 0))]   # x_j block
                 + [const2d(a) for a in weight_args],
        out_specs=(pl.BlockSpec((bi, feature_dim), lambda i, j: (i, 0)),
                   pl.BlockSpec((bi, bj, c), lambda i, j: (i, j, 0))),
        compiler_params=pltpu.CompilerParams(
            dimension_semantics=("parallel", "arbitrary"),
            vmem_limit_bytes=56 * 1024 * 1024),
    )(x, x, *weight_args)

    node_features = node_feat[:n]
    edge_block = edge_out[:n, :n]            # narrow (n, n, 1+edge_dim); sliced once
    edge_logits = edge_block[..., 0]
    edge_features = edge_block[..., 1:]
    return node_features, (edge_logits, edge_features)


# ----------------------------------------------------------------------------
# Pure-JAX reference (unfolded BN, explicit repeat/tile/concat) for validation
# ----------------------------------------------------------------------------
def _reference_forward(x, raw, edge_dim):
    def bn(v, g, b, m, var):
        return (v - m) * lax.rsqrt(var + BN_EPS) * g + b

    nw1, nb1, ng, nbe, nm, nv, nw2, nb2 = raw["node"]
    h = jnp.maximum(bn(x @ nw1 + nb1, ng, nbe, nm, nv), 0.0)
    node_features = h @ nw2 + nb2

    n = x.shape[0]
    node_i = jnp.repeat(x, n, axis=0)
    node_j = jnp.tile(x, (n, 1))
    e_in = jnp.concatenate([node_i, node_j], axis=1)
    (ew1, eb1, eg1, ebe1, em1, ev1,
     ew2, eb2, eg2, ebe2, em2, ev2, ew3, eb3) = raw["edge"]
    h = jnp.maximum(bn(e_in @ ew1 + eb1, eg1, ebe1, em1, ev1), 0.0)
    h = jnp.maximum(bn(h @ ew2 + eb2, eg2, ebe2, em2, ev2), 0.0)
    out = h @ ew3 + eb3
    return node_features, out[:, 0].reshape(n, n), out[:, 1:].reshape(n, n, edge_dim)


if __name__ == "__main__":
    # Small shapes: embedding_dim=32, hidden_channels=32, feature_dim=16, edge_dim=4
    # (num_layers=2).
    E, H, F, ED = 32, 32, 16, 4
    key = jax.random.PRNGKey(0)
    k_x, k_x2, k_p = jax.random.split(key, 3)

    raw_params = init_graph_decoder_params(k_p, E, H, F, ED)
    fparams = prepare_graph_decoder_params(raw_params, E)

    # --- Case 1: N multiple of 8 ---
    N = 8
    node_embeddings = jax.random.normal(k_x, (N, E), jnp.float32)
    node_features, (edge_logits, edge_features) = graph_decoder_forward(
        node_embeddings, fparams, feature_dim=F, edge_dim=ED)
    jax.block_until_ready((node_features, edge_logits, edge_features))

    assert node_features.shape == (N, F)
    assert edge_logits.shape == (N, N)
    assert edge_features.shape == (N, N, ED)

    ref_nf, ref_logits, ref_ef = _reference_forward(node_embeddings, raw_params, ED)
    assert jnp.allclose(node_features, ref_nf, rtol=1e-4, atol=1e-4)
    assert jnp.allclose(edge_logits, ref_logits, rtol=1e-4, atol=1e-4)
    assert jnp.allclose(edge_features, ref_ef, rtol=1e-4, atol=1e-4)

    # --- Case 2: N not a multiple of 8 (exercises the padding path, review #7) ---
    N2 = 12
    x2 = jax.random.normal(k_x2, (N2, E), jnp.float32)
    nf2, (el2, ef2) = graph_decoder_forward(x2, fparams, feature_dim=F, edge_dim=ED)
    jax.block_until_ready((nf2, el2, ef2))
    ref_nf2, ref_el2, ref_ef2 = _reference_forward(x2, raw_params, ED)
    assert nf2.shape == (N2, F) and el2.shape == (N2, N2) and ef2.shape == (N2, N2, ED)
    assert jnp.allclose(nf2, ref_nf2, rtol=1e-4, atol=1e-4)
    assert jnp.allclose(el2, ref_el2, rtol=1e-4, atol=1e-4)
    assert jnp.allclose(ef2, ref_ef2, rtol=1e-4, atol=1e-4)

    print("KERNEL_OK")
</pallas_src>

<mosaic_0001>
module attributes {stable_mosaic.version = 11 : i64} {
  func.func @graph_decoder_kernel(%arg0: i32, %arg1: i32, %arg2: memref<8x32xf32, #tpu.memory_space<vmem>>, %arg3: memref<8x32xf32, #tpu.memory_space<vmem>>, %arg4: memref<32x32xf32, #tpu.memory_space<vmem>>, %arg5: memref<1x32xf32, #tpu.memory_space<vmem>>, %arg6: memref<32x16xf32, #tpu.memory_space<vmem>>, %arg7: memref<1x16xf32, #tpu.memory_space<vmem>>, %arg8: memref<32x32xf32, #tpu.memory_space<vmem>>, %arg9: memref<32x32xf32, #tpu.memory_space<vmem>>, %arg10: memref<1x32xf32, #tpu.memory_space<vmem>>, %arg11: memref<32x32xf32, #tpu.memory_space<vmem>>, %arg12: memref<1x32xf32, #tpu.memory_space<vmem>>, %arg13: memref<32x5xf32, #tpu.memory_space<vmem>>, %arg14: memref<1x5xf32, #tpu.memory_space<vmem>>, %arg15: memref<8x16xf32, #tpu.memory_space<vmem>>, %arg16: memref<8x8x5xf32, #tpu.memory_space<vmem>>) attributes {dimension_semantics = [#tpu.dimension_semantics<parallel>, #tpu.dimension_semantics<arbitrary>], iteration_bounds = array<i64: 1, 1>, scalar_prefetch = 0 : i64, scratch_operands = 0 : i64, tpu.core_type = #tpu.core_type<tc>, window_params = [{transform_indices = @transform_0, window_bounds = array<i64: 8, 32>}, {transform_indices = @transform_1, window_bounds = array<i64: 8, 32>}, {pipeline_mode = #tpu.pipeline_mode<synchronous>, transform_indices = @transform_2, window_bounds = array<i64: 32, 32>}, {pipeline_mode = #tpu.pipeline_mode<synchronous>, transform_indices = @transform_3, window_bounds = array<i64: 1, 32>}, {pipeline_mode = #tpu.pipeline_mode<synchronous>, transform_indices = @transform_4, window_bounds = array<i64: 32, 16>}, {pipeline_mode = #tpu.pipeline_mode<synchronous>, transform_indices = @transform_5, window_bounds = array<i64: 1, 16>}, {pipeline_mode = #tpu.pipeline_mode<synchronous>, transform_indices = @transform_6, window_bounds = array<i64: 32, 32>}, {pipeline_mode = #tpu.pipeline_mode<synchronous>, transform_indices = @transform_7, window_bounds = array<i64: 32, 32>}, {pipeline_mode = #tpu.pipeline_mode<synchronous>, transform_indices = @transform_8, window_bounds = array<i64: 1, 32>}, {pipeline_mode = #tpu.pipeline_mode<synchronous>, transform_indices = @transform_9, window_bounds = array<i64: 32, 32>}, {pipeline_mode = #tpu.pipeline_mode<synchronous>, transform_indices = @transform_10, window_bounds = array<i64: 1, 32>}, {pipeline_mode = #tpu.pipeline_mode<synchronous>, transform_indices = @transform_11, window_bounds = array<i64: 32, 5>}, {pipeline_mode = #tpu.pipeline_mode<synchronous>, transform_indices = @transform_12, window_bounds = array<i64: 1, 5>}, {transform_indices = @transform_13, window_bounds = array<i64: 8, 16>}, {transform_indices = @transform_14, window_bounds = array<i64: 8, 8, 5>}]} {
    %c0 = arith.constant 0 : index
    %c0_0 = arith.constant 0 : index
    %0 = vector.load %arg2[%c0, %c0_0] : memref<8x32xf32, #tpu.memory_space<vmem>>, vector<8x32xf32>
    %c0_i32 = arith.constant 0 : i32
    %1 = arith.cmpi eq, %arg1, %c0_i32 : i32
    %2 = arith.extui %1 : i1 to i32
    %c0_i32_1 = arith.constant 0 : i32
    %3 = arith.cmpi ne, %2, %c0_i32_1 : i32
    scf.if %3 {
      %c0_26 = arith.constant 0 : index
      %c0_27 = arith.constant 0 : index
      %34 = vector.load %arg4[%c0_26, %c0_27] : memref<32x32xf32, #tpu.memory_space<vmem>>, vector<32x32xf32>
      %cst_28 = arith.constant dense<0.000000e+00> : vector<8x32xf32>
      %35 = tpu.matmul %0, %34, %cst_28 {dimension_numbers = #tpu.dot_dimension_numbers<[1], [0], [0], [1], [0, 0, 1, 1], [], []>} : vector<8x32xf32>, vector<32x32xf32>, vector<8x32xf32> -> vector<8x32xf32>
      %c0_29 = arith.constant 0 : index
      %c0_30 = arith.constant 0 : index
      %36 = vector.load %arg5[%c0_29, %c0_30] : memref<1x32xf32, #tpu.memory_space<vmem>>, vector<1x32xf32>
      %37 = vector.broadcast %36 : vector<1x32xf32> to vector<8x32xf32>
      %38 = arith.addf %35, %37 : vector<8x32xf32>
      %cst_31 = arith.constant 0.000000e+00 : f32
      %39 = vector.broadcast %cst_31 : f32 to vector<8x32xf32>
      %40 = arith.maximumf %38, %39 : vector<8x32xf32>
      %c0_32 = arith.constant 0 : index
      %c0_33 = arith.constant 0 : index
      %41 = vector.load %arg6[%c0_32, %c0_33] : memref<32x16xf32, #tpu.memory_space<vmem>>, vector<32x16xf32>
      %cst_34 = arith.constant dense<0.000000e+00> : vector<8x16xf32>
      %42 = tpu.matmul %40, %41, %cst_34 {dimension_numbers = #tpu.dot_dimension_numbers<[1], [0], [0], [1], [0, 0, 1, 1], [], []>} : vector<8x32xf32>, vector<32x16xf32>, vector<8x16xf32> -> vector<8x16xf32>
      %c0_35 = arith.constant 0 : index
      %c0_36 = arith.constant 0 : index
      %43 = vector.load %arg7[%c0_35, %c0_36] : memref<1x16xf32, #tpu.memory_space<vmem>>, vector<1x16xf32>
      %44 = vector.broadcast %43 : vector<1x16xf32> to vector<8x16xf32>
      %45 = arith.addf %42, %44 : vector<8x16xf32>
      %c0_37 = arith.constant 0 : index
      %c0_38 = arith.constant 0 : index
      %46 = vector.load %arg15[%c0_37, %c0_38] : memref<8x16xf32, #tpu.memory_space<vmem>>, vector<8x16xf32>
      tpu.vector_store %arg15[%c0_37, %c0_38], %45 {strides = array<i32>} : memref<8x16xf32, #tpu.memory_space<vmem>>, vector<8x16xf32>,
    } else {
    }
    %c0_2 = arith.constant 0 : index
    %c0_3 = arith.constant 0 : index
    %4 = vector.load %arg8[%c0_2, %c0_3] : memref<32x32xf32, #tpu.memory_space<vmem>>, vector<32x32xf32>
    %cst = arith.constant dense<0.000000e+00> : vector<8x32xf32>
    %5 = tpu.matmul %0, %4, %cst {dimension_numbers = #tpu.dot_dimension_numbers<[1], [0], [0], [1], [0, 0, 1, 1], [], []>} : vector<8x32xf32>, vector<32x32xf32>, vector<8x32xf32> -> vector<8x32xf32>
    %c0_4 = arith.constant 0 : index
    %c0_5 = arith.constant 0 : index
    %6 = vector.load %arg3[%c0_4, %c0_5] : memref<8x32xf32, #tpu.memory_space<vmem>>, vector<8x32xf32>
    %c0_6 = arith.constant 0 : index
    %c0_7 = arith.constant 0 : index
    %7 = vector.load %arg9[%c0_6, %c0_7] : memref<32x32xf32, #tpu.memory_space<vmem>>, vector<32x32xf32>
    %cst_8 = arith.constant dense<0.000000e+00> : vector<8x32xf32>
    %8 = tpu.matmul %6, %7, %cst_8 {dimension_numbers = #tpu.dot_dimension_numbers<[1], [0], [0], [1], [0, 0, 1, 1], [], []>} : vector<8x32xf32>, vector<32x32xf32>, vector<8x32xf32> -> vector<8x32xf32>
    %c0_9 = arith.constant 0 : index
    %c0_10 = arith.constant 0 : index
    %9 = vector.load %arg10[%c0_9, %c0_10] : memref<1x32xf32, #tpu.memory_space<vmem>>, vector<1x32xf32>
    %10 = vector.broadcast %9 : vector<1x32xf32> to vector<8x32xf32>
    %11 = arith.addf %8, %10 : vector<8x32xf32>
    %12 = vector.shape_cast %5 : vector<8x32xf32> to vector<8x1x32xf32>
    %13 = vector.shape_cast %11 : vector<8x32xf32> to vector<1x8x32xf32>
    %14 = vector.broadcast %12 : vector<8x1x32xf32> to vector<8x8x32xf32>
    %15 = vector.broadcast %13 : vector<1x8x32xf32> to vector<8x8x32xf32>
    %16 = arith.addf %14, %15 : vector<8x8x32xf32>
    %cst_11 = arith.constant 0.000000e+00 : f32
    %17 = vector.broadcast %cst_11 : f32 to vector<8x8x32xf32>
    %18 = arith.maximumf %16, %17 : vector<8x8x32xf32>
    %19 = vector.shape_cast %18 : vector<8x8x32xf32> to vector<64x32xf32>
    %c0_12 = arith.constant 0 : index
    %c0_13 = arith.constant 0 : index
    %20 = vector.load %arg11[%c0_12, %c0_13] : memref<32x32xf32, #tpu.memory_space<vmem>>, vector<32x32xf32>
    %cst_14 = arith.constant dense<0.000000e+00> : vector<64x32xf32>
    %21 = tpu.matmul %19, %20, %cst_14 {dimension_numbers = #tpu.dot_dimension_numbers<[1], [0], [0], [1], [0, 0, 1, 1], [], []>} : vector<64x32xf32>, vector<32x32xf32>, vector<64x32xf32> -> vector<64x32xf32>
    %c0_15 = arith.constant 0 : index
    %c0_16 = arith.constant 0 : index
    %22 = vector.load %arg12[%c0_15, %c0_16] : memref<1x32xf32, #tpu.memory_space<vmem>>, vector<1x32xf32>
    %23 = vector.broadcast %22 : vector<1x32xf32> to vector<64x32xf32>
    %24 = arith.addf %21, %23 : vector<64x32xf32>
    %cst_17 = arith.constant 0.000000e+00 : f32
    %25 = vector.broadcast %cst_17 : f32 to vector<64x32xf32>
    %26 = arith.maximumf %24, %25 : vector<64x32xf32>
    %c0_18 = arith.constant 0 : index
    %c0_19 = arith.constant 0 : index
    %27 = vector.load %arg13[%c0_18, %c0_19] : memref<32x5xf32, #tpu.memory_space<vmem>>, vector<32x5xf32>
    %cst_20 = arith.constant dense<0.000000e+00> : vector<64x5xf32>
    %28 = tpu.matmul %26, %27, %cst_20 {dimension_numbers = #tpu.dot_dimension_numbers<[1], [0], [0], [1], [0, 0, 1, 1], [], []>} : vector<64x32xf32>, vector<32x5xf32>, vector<64x5xf32> -> vector<64x5xf32>
    %c0_21 = arith.constant 0 : index
    %c0_22 = arith.constant 0 : index
    %29 = vector.load %arg14[%c0_21, %c0_22] : memref<1x5xf32, #tpu.memory_space<vmem>>, vector<1x5xf32>
    %30 = vector.broadcast %29 : vector<1x5xf32> to vector<64x5xf32>
    %31 = arith.addf %28, %30 : vector<64x5xf32>
    %32 = vector.shape_cast %31 : vector<64x5xf32> to vector<8x8x5xf32>
    %c0_23 = arith.constant 0 : index
    %c0_24 = arith.constant 0 : index
    %c0_25 = arith.constant 0 : index
    %33 = vector.load %arg16[%c0_23, %c0_24, %c0_25] : memref<8x8x5xf32, #tpu.memory_space<vmem>>, vector<8x8x5xf32>
    tpu.vector_store %arg16[%c0_23, %c0_24, %c0_25], %32 {strides = array<i32>} : memref<8x8x5xf32, #tpu.memory_space<vmem>>, vector<8x8x5xf32>,
    return
  }
  func.func @transform_0(%arg0: i32, %arg1: i32) -> (i32, i32) {
    %c0_i32 = arith.constant 0 : i32
    %c0_i32_0 = arith.constant 0 : i32
    return %arg0, %c0_i32 : i32, i32
  }
  func.func @transform_1(%arg0: i32, %arg1: i32) -> (i32, i32) {
    %c0_i32 = arith.constant 0 : i32
    %c0_i32_0 = arith.constant 0 : i32
    return %arg1, %c0_i32 : i32, i32
  }
  func.func @transform_2(%arg0: i32, %arg1: i32) -> (i32, i32) {
    %c0_i32 = arith.constant 0 : i32
    %c0_i32_0 = arith.constant 0 : i32
    %c0_i32_1 = arith.constant 0 : i32
    return %c0_i32, %c0_i32_0 : i32, i32
  }
  func.func @transform_3(%arg0: i32, %arg1: i32) -> (i32, i32) {
    %c0_i32 = arith.constant 0 : i32
    %c0_i32_0 = arith.constant 0 : i32
    %c0_i32_1 = arith.constant 0 : i32
    return %c0_i32, %c0_i32_0 : i32, i32
  }
  func.func @transform_4(%arg0: i32, %arg1: i32) -> (i32, i32) {
    %c0_i32 = arith.constant 0 : i32
    %c0_i32_0 = arith.constant 0 : i32
    %c0_i32_1 = arith.constant 0 : i32
    return %c0_i32, %c0_i32_0 : i32, i32
  }
  func.func @transform_5(%arg0: i32, %arg1: i32) -> (i32, i32) {
    %c0_i32 = arith.constant 0 : i32
    %c0_i32_0 = arith.constant 0 : i32
    %c0_i32_1 = arith.constant 0 : i32
    return %c0_i32, %c0_i32_0 : i32, i32
  }
  func.func @transform_6(%arg0: i32, %arg1: i32) -> (i32, i32) {
    %c0_i32 = arith.constant 0 : i32
    %c0_i32_0 = arith.constant 0 : i32
    %c0_i32_1 = arith.constant 0 : i32
    return %c0_i32, %c0_i32_0 : i32, i32
  }
  func.func @transform_7(%arg0: i32, %arg1: i32) -> (i32, i32) {
    %c0_i32 = arith.constant 0 : i32
    %c0_i32_0 = arith.constant 0 : i32
    %c0_i32_1 = arith.constant 0 : i32
    return %c0_i32, %c0_i32_0 : i32, i32
  }
  func.func @transform_8(%arg0: i32, %arg1: i32) -> (i32, i32) {
    %c0_i32 = arith.constant 0 : i32
    %c0_i32_0 = arith.constant 0 : i32
    %c0_i32_1 = arith.constant 0 : i32
    return %c0_i32, %c0_i32_0 : i32, i32
  }
  func.func @transform_9(%arg0: i32, %arg1: i32) -> (i32, i32) {
    %c0_i32 = arith.constant 0 : i32
    %c0_i32_0 = arith.constant 0 : i32
    %c0_i32_1 = arith.constant 0 : i32
    return %c0_i32, %c0_i32_0 : i32, i32
  }
  func.func @transform_10(%arg0: i32, %arg1: i32) -> (i32, i32) {
    %c0_i32 = arith.constant 0 : i32
    %c0_i32_0 = arith.constant 0 : i32
    %c0_i32_1 = arith.constant 0 : i32
    return %c0_i32, %c0_i32_0 : i32, i32
  }
  func.func @transform_11(%arg0: i32, %arg1: i32) -> (i32, i32) {
    %c0_i32 = arith.constant 0 : i32
    %c0_i32_0 = arith.constant 0 : i32
    %c0_i32_1 = arith.constant 0 : i32
    return %c0_i32, %c0_i32_0 : i32, i32
  }
  func.func @transform_12(%arg0: i32, %arg1: i32) -> (i32, i32) {
    %c0_i32 = arith.constant 0 : i32
    %c0_i32_0 = arith.constant 0 : i32
    %c0_i32_1 = arith.constant 0 : i32
    return %c0_i32, %c0_i32_0 : i32, i32
  }
  func.func @transform_13(%arg0: i32, %arg1: i32) -> (i32, i32) {
    %c0_i32 = arith.constant 0 : i32
    %c0_i32_0 = arith.constant 0 : i32
    return %arg0, %c0_i32 : i32, i32
  }
  func.func @transform_14(%arg0: i32, %arg1: i32) -> (i32, i32, i32) {
    %c0_i32 = arith.constant 0 : i32
    %c0_i32_0 = arith.constant 0 : i32
    return %arg0, %arg1, %c0_i32 : i32, i32, i32
  }
}

</mosaic_0001>

<bundles_post_ra>
// kernel: graph_decoder_forward.1
= control target key start
LH: loop header
LB: loop body
LE: loop exit
PB: predicated region body
PF: predicated region fallthrough
CT: control target
= control target key end

     0   :  { %20 = vsyncpa [#allocation3], 0  ;;  %s1429_s0 = inlined_call_operand.hbm [shape: f32[8,32], index: 0, kind: input, shape index: {}, may-alias: {0,1}]   ;;  %s1430_s1 = inlined_call_operand.hbm [shape: f32[8,32], index: 1, kind: input, shape index: {}, may-alias: {0,1}]   ;;  %s1431_s2 = inlined_call_operand.vmem [shape: f32[32,32], index: 2, kind: input, shape index: {}]   ;;  %s1432_s3 = inlined_call_operand.vmem [shape: f32[1,32], index: 3, kind: input, shape index: {}]   ;;  %s1433_s4 = inlined_call_operand.vmem [shape: f32[32,16], index: 4, kind: input, shape index: {}]   ;;  %s1434_s5 = inlined_call_operand.vmem [shape: f32[1,16], index: 5, kind: input, shape index: {}]   ;;  %s1435_s6 = inlined_call_operand.vmem [shape: f32[32,32], index: 6, kind: input, shape index: {}]   ;;  %s1436_s7 = inlined_call_operand.vmem [shape: f32[32,32], index: 7, kind: input, shape index: {}]   ;;  %s1437_s8 = inlined_call_operand.hbm [shape: f32[1,32], index: 8, kind: input, shape index: {}]   ;;  %s1438_s9 = inlined_call_operand.hbm [shape: f32[32,32], index: 9, kind: input, shape index: {}]   ;;  %s1439_s10 = inlined_call_operand.hbm [shape: f32[1,32], index: 10, kind: input, shape index: {}]   ;;  %s1440_s11 = inlined_call_operand.vmem [shape: f32[32,5], index: 11, kind: input, shape index: {}]   ;;  %s1441_s12 = inlined_call_operand.hbm [shape: f32[1,5], index: 12, kind: input, shape index: {}]   ;;  %s1442_s13 = inlined_call_operand.hbm [shape: f32[8,16], index: 13, kind: output, shape index: {0}]   ;;  %s1443_s14 = inlined_call_operand.vmem [shape: f32[8,8,5], index: 14, kind: output, shape index: {1}]  }
   0x1   :  { %21 = vsyncpa [#allocation6], 0 }
   0x2   :  { %22 = vsyncpa [#allocation9], 0 }
   0x3   :  { %23 = vsyncpa [#allocation12], 0 }
   0x4   :  { %24 = vsyncpa [#allocation4], 0  ;;  %s1199_s29 = smov [#allocation5]   ;;  %s1200_s15 = smov [#allocation8]  }
   0x5   :  { %s41_s30 = sshll.u32 %s1199_s29, 4  ;;  %s72_s16 = sshll.u32 %s1200_s15, 4  ;;  %s42_s30 = int_to_ptr.vmem [resolvable:$true] %s41_s30  ;;  %s73_s16 = int_to_ptr.vmem [resolvable:$true] %s72_s16 }
   0x6   :  { %s1057_s17 = scalar_lea.vmem %s42_s30, 128  ;;  %p1062_p1 = scmp.lt.s32.totalorder %s42_s30, %s42_s30 }
   0x7   :  { %p1058_p0 = scmp.ne.s32.totalorder %s42_s30, %s1057_s17  ;;  %p1063_p2 = scmp.lt.s32.totalorder %s1057_s17, %s1057_s17 }
   0x9   :  { %p1064_p3 = por %p1063_p2, %p1062_p1 }
   0xb   :  { %p1065_p4 = pnand %p1064_p3, %p1058_p0 }
   0xd   :  { %1068 = shalt.err (!%p1065_p4)
}
   0xe   :  { %44 = dma.hbm_to_vmem [thread:$0]  %s1430_s1, 128, %s42_s30, [#allocation6]  }
   0xf   :  { %s1077_s20 = scalar_lea.vmem %s73_s16, 512  ;;  %p1082_p6 = scmp.lt.s32.totalorder %s73_s16, %s73_s16 }
  0x10   :  { %p1078_p5 = scmp.ne.s32.totalorder %s73_s16, %s1077_s20  ;;  %p1083_p7 = scmp.lt.s32.totalorder %s1077_s20, %s1077_s20 }
  0x12   :  { %p1084_p8 = por %p1083_p7, %p1082_p6 }
  0x14   :  { %p1085_p9 = pnand %p1084_p8, %p1078_p5 }
  0x16   :  { %1088 = shalt.err (!%p1085_p9)
}
  0x17   :  { %s1201_s21 = smov 128   ;;  %s1202_s22 = smov 8  }
  0x18   :  { %78 = dma.hbm_to_vmem [thread:$0]  %s1438_s9, 512, %s73_s16, [#allocation9], %s1201_s21, %s1201_s21, %s1202_s22  }
  0x19   :  { %s1203_s25 = smov [#allocation2]   ;;  %s1204_s27 = smov [#allocation7]  }
  0x1a   :  { %s31_s26 = sshll.u32 %s1203_s25, 4  ;;  %s63_s28 = sshll.u32 %s1204_s27, 4  ;;  %s32_s26 = int_to_ptr.vmem [resolvable:$true] %s31_s26  ;;  %s64_s28 = int_to_ptr.vmem [resolvable:$true] %s63_s28 }
  0x1b   :  { %s1097_s1 = scalar_lea.vmem %s32_s26, 128  ;;  %p1102_p11 = scmp.lt.s32.totalorder %s32_s26, %s32_s26 }
  0x1c   :  { %p1098_p10 = scmp.ne.s32.totalorder %s32_s26, %s1097_s1  ;;  %p1103_p12 = scmp.lt.s32.totalorder %s1097_s1, %s1097_s1 }
  0x1e   :  { %p1104_p13 = por %p1103_p12, %p1102_p11 }
  0x20   :  { %p1105_p0 = pnand %p1104_p13, %p1098_p10 }
  0x22   :  { %1108 = shalt.err (!%p1105_p0)
}
  0x23   :  { %34 = dma.hbm_to_vmem [thread:$0]  %s1429_s0, 128, %s32_s26, [#allocation3]  }
  0x24   :  { %s1117_s15 = scalar_lea.vmem %s64_s28, 16  ;;  %s1121_s9 = scalar_lea.vmem %s64_s28, 32 }
  0x25   :  { %p1118_p1 = scmp.ne.s32.totalorder %s64_s28, %s1117_s15  ;;  %p1122_p2 = scmp.lt.s32.totalorder %s64_s28, %s64_s28 }
  0x26   :  { %p1123_p3 = scmp.lt.s32.totalorder %s1121_s9, %s1117_s15 }
  0x28   :  { %p1124_p4 = por %p1123_p3, %p1122_p2 }
  0x2a   :  { %p1125_p5 = pnand %p1124_p4, %p1118_p1 }
  0x2c   :  { %1128 = shalt.err (!%p1125_p5)
}
  0x2d   :  { %66 = dma.hbm_to_vmem [thread:$0]  %s1437_s8, 16, %s64_s28, [#allocation6]  }
  0x2e   :  { %s1205_s18 = smov [#allocation10]   ;;  %s1206_s20 = smov [#allocation11]  }
  0x2f   :  { %s85_s19 = sshll.u32 %s1205_s18, 4  ;;  %s97_s21 = sshll.u32 %s1206_s20, 4  ;;  %s86_s19 = int_to_ptr.vmem [resolvable:$true] %s85_s19  ;;  %s98_s21 = int_to_ptr.vmem [resolvable:$true] %s97_s21 }
  0x30   :  { %s1137_s22 = scalar_lea.vmem %s86_s19, 16  ;;  %s1141_s0 = scalar_lea.vmem %s86_s19, 32 }
  0x31   :  { %p1138_p6 = scmp.ne.s32.totalorder %s86_s19, %s1137_s22  ;;  %p1142_p7 = scmp.lt.s32.totalorder %s86_s19, %s86_s19 }
  0x32   :  { %p1143_p8 = scmp.lt.s32.totalorder %s1141_s0, %s1137_s22 }
  0x34   :  { %p1144_p9 = por %p1143_p8, %p1142_p7 }
  0x36   :  { %p1145_p10 = pnand %p1144_p9, %p1138_p6 }
  0x38   :  { %1148 = shalt.err (!%p1145_p10)
}
  0x39   :  { %88 = dma.hbm_to_vmem [thread:$0]  %s1439_s10, 16, %s86_s19, [#allocation9]  }
  0x3a   :  { %s1157_s25 = scalar_lea.vmem %s98_s21, 16  ;;  %s1161_s8 = scalar_lea.vmem %s98_s21, 32 }
  0x3b   :  { %p1158_p11 = scmp.ne.s32.totalorder %s98_s21, %s1157_s25  ;;  %p1162_p12 = scmp.lt.s32.totalorder %s98_s21, %s98_s21 }
  0x3c   :  { %p1163_p13 = scmp.lt.s32.totalorder %s1161_s8, %s1157_s25 }
  0x3e   :  { %p1164_p0 = por %p1163_p13, %p1162_p12 }
  0x40   :  { %p1165_p1 = pnand %p1164_p0, %p1158_p11 }
  0x42   :  { %1168 = shalt.err (!%p1165_p1)
}
  0x43   :  { %100 = dma.hbm_to_vmem [thread:$0]  %s1441_s12, 16, %s98_s21, [#allocation12]  }
  0x44   :  { %1189 = dma.done.wait [#allocation3], 128  }
  0x45   :  { %1190 = vsyncadd [#allocation3], 4294967168 }
  0x46   :  { %1191 = dma.done.wait [#allocation6], 144  }
  0x47   :  { %1192 = vsyncadd [#allocation6], 4294967152 }
  0x48   :  { %1193 = dma.done.wait [#allocation9], 528  }
  0x49   :  { %1194 = vsyncadd [#allocation9], 4294966768 }
  0x4a   :  { %1195 = dma.done.wait [#allocation12], 16  }
  0x4b   :  { %1196 = vsyncadd [#allocation12], 4294967280  ;;  %v1207_v0 = vmov 0.0   ;;  %vm1208_vm0 = vmmov 0   ;;  %v127_v1 = vld [vmem:[%s1431_s2 + $0x18] sm:$0xff]  ;;  %v126_v2 = vld [vmem:[%s1431_s2 + $0x10] sm:$0xff]  ;;  %v464_v32 = vlaneseq }
  0x4c   :  { %953 = vmatprep.subr.mxu0 %v1207_v0  ;;  %961 = vmatprep.mubr.msk.f32.mxu0 %vm1208_vm0, %v1207_v0  ;;  %v125_v3 = vld [vmem:[%s1431_s2 + $0x8] sm:$0xff]  ;;  %v213_v4 = vld [vmem:[%s1433_s4 + $0x18] sm:$0xff]  ;;  %v212_v5 = vld [vmem:[%s1433_s4 + $0x10] sm:$0xff]  ;;  %vm135_vm1 = vcmask 261120   ;;  %v1209_v30 = vmov 1966171168  }
  0x4d   :  { %964 = vmatprep.subr.mxu1 %v1207_v0  ;;  %972 = vmatprep.mubr.msk.f32.mxu1 %vm1208_vm0, %v1207_v0  ;;  %v124_v6 = vld [vmem:[%s1431_s2] sm:$0xff]  ;;  %v299_v8 = vld [vmem:[%s1435_s6 + $0x18] sm:$0xff]  ;;  %v298_v9 = vld [vmem:[%s1435_s6 + $0x10] sm:$0xff]  ;;  %v462_v31 = vunpack.c.l.s4 %v1209_v30  ;;  %v465_v34 = vshrl.u32 %v464_v32, 7  ;;  %vm294_vm2 = vcmask 130048  }
  0x4e   :  { %954 = vmatpush3.msra.mxu0 %v127_v1  ;;  %965 = vmatpush3.msra.mxu1 %v213_v4  ;;  %v119_v7 = vld [vmem:[#allocation2] sm:$0xff]  ;;  %v297_v10 = vld [vmem:[%s1435_s6 + $0x8] sm:$0xff]  ;;  %v378_v19 = vld [vmem:[%s1436_s7 + $0x18] sm:$0xff] }
  0x4f   :  { %955 = vmatprep.subr.mxu0 %v1207_v0  ;;  %966 = vmatprep.subr.mxu1 %v1207_v0  ;;  %v211_v11 = vld [vmem:[%s1433_s4 + $0x8] sm:$0xff]  ;;  %v296_v12 = vld [vmem:[%s1435_s6] sm:$0xff]  ;;  %v377_v20 = vld [vmem:[%s1436_s7 + $0x10] sm:$0xff]  ;;  %v463_v33 = vunpack.c.0.s8 %v462_v31  ;;  %v511_v47 = vsub.s32 0, %v465_v34 }
  0x50   :  { %956 = vmatpush3.msra.mxu0 %v126_v2  ;;  %967 = vmatpush3.msra.mxu1 %v212_v5  ;;  %v210_v13 = vld [vmem:[%s1433_s4] sm:$0xff]  ;;  %v376_v21 = vld [vmem:[%s1436_s7 + $0x8] sm:$0xff]  ;;  %v565_v29 = vld [vmem:[#allocation8] sm:$0xff] }
  0x51   :  { %957 = vmatprep.subr.mxu0 %v1207_v0  ;;  %968 = vmatprep.subr.mxu1 %v1207_v0  ;;  %v884_v14 = vld [vmem:[%s1432_s3] ss:$0 sm:$0xff]  ;;  %v374_v23 = vld [vmem:[#allocation5] sm:$0xff]  ;;  %v466_v35 = vsub.s32 %v463_v33, %v465_v34  ;;  %v889_v51 = vld [vmem:[#allocation7] ss:$0 sm:$0xff] }
  0x52   :  { %958 = vmatpush3.msra.mxu0 %v125_v3  ;;  %969 = vmatpush3.msra.mxu1 %v211_v11  ;;  %v375_v22 = vld [vmem:[%s1436_s7] sm:$0xff]  ;;  %v568_v26 = vld [vmem:[#allocation8 + $0x18] sm:$0xff] }
  0x53   :  { %959 = vmatprep.subr.mxu0 %v1207_v0  ;;  %970 = vmatprep.subr.mxu1 %v1207_v0  ;;  %v567_v27 = vld [vmem:[#allocation8 + $0x10] sm:$0xff]  ;;  %v566_v28 = vld [vmem:[#allocation8 + $0x8] sm:$0xff] }
  0x54   :  { %960 = vmatpush3.msra.mxu0 %v124_v6  ;;  %971 = vmatpush3.msra.mxu1 %v210_v13  ;;  %v886_v39 = vld [vmem:[%s1434_s5] ss:$0 sm:$0xff] }
  0x55   :  { %962 = vmatmul.mubr.msk.f32.vlgmr.msra.gmra.mxu0 %vm135_vm1, %v119_v7  ;;  %975 = vmatprep.subr.mxu0 %v1207_v0 }
  0x56   :  { %976 = vmatpush3.msra.mxu0 %v299_v8  ;;  %983 = vmatprep.mubr.msk.f32.mxu0 %vm1208_vm0, %v1207_v0 }
  0x57   :  { %977 = vmatprep.subr.mxu0 %v1207_v0  ;;  %986 = vmatprep.subr.mxu1 %v1207_v0 }
  0x58   :  { %978 = vmatpush3.msra.mxu0 %v298_v9 }
  0x59   :  { %979 = vmatprep.subr.mxu0 %v1207_v0 }
  0x5a   :  { %980 = vmatpush3.msra.mxu0 %v297_v10 }
  0x5b   :  { %981 = vmatprep.subr.mxu0 %v1207_v0 }
  0x5c   :  { %982 = vmatpush3.msra.mxu0 %v296_v12 }
  0x5d   :  { %984 = vmatmul.mubr.msk.f32.vlgmr.msra.gmra.mxu0 %vm135_vm1, %v119_v7  ;;  %997 = vmatprep.subr.mxu0 %v568_v26 }
  0x5e   :  { %998 = vmatpush3.msra.mxu0 %v568_v26 }
  0x5f   :  { %999 = vmatprep.subr.mxu0 %v567_v27 }
  0x60   :  { %1000 = vmatpush3.msra.mxu0 %v567_v27 }
  0x61   :  { %1001 = vmatprep.subr.mxu0 %v566_v28 }
  0x62   :  { %1002 = vmatpush3.msra.mxu0 %v566_v28 }
  0x63   :  { %1003 = vmatprep.subr.mxu0 %v565_v29 }
  0x64   :  { %1004 = vmatpush3.msra.mxu0 %v565_v29 }
 0x115   :  { %v205_v15 = vpop.f32.mrf.mxu0 }
 0x116   :  { %v206_v16 = vadd.f32 %v884_v14, %v205_v15 }
 0x117   :  { %v963_v17 = vpop.f32.mrf.mxu0 }
 0x118   :  { %v209_v18 = vmax.f32 %v206_v16, 0.0 }
 0x11a   :  { %973 = vmatmul.mubr.msk.f32.vlgmr.msra.gmra.mxu1 %vm135_vm1, %v209_v18  ;;  %v716_v18 = vld [vmem:[%s1440_s11 + $0x18] sm:$0xff] }
 0x11b   :  { %987 = vmatpush3.msra.mxu1 %v378_v19  ;;  %994 = vmatprep.mubr.msk.f32.mxu1 %vm1208_vm0, %v1207_v0  ;;  %v715_v19 = vld [vmem:[%s1440_s11 + $0x10] sm:$0xff] }
 0x11c   :  { %988 = vmatprep.subr.mxu1 %v1207_v0 }
 0x11d   :  { %989 = vmatpush3.msra.mxu1 %v377_v20  ;;  %v370_v24 = vpop.f32.mrf.mxu0  ;;  %v714_v20 = vld [vmem:[%s1440_s11 + $0x8] sm:$0xff] }
 0x11e   :  { %990 = vmatprep.subr.mxu1 %v1207_v0  ;;  %v467_v36 = vrot.slane %v370_v24, %v466_v35  ;;  %v460_v37 = vcombine.high %v370_v24, %v370_v24 }
 0x11f   :  { %991 = vmatpush3.msra.mxu1 %v376_v21  ;;  %v985_v25 = vpop.f32.mrf.mxu0  ;;  %v713_v21 = vld [vmem:[%s1440_s11] sm:$0xff]  ;;  %s1210_s11 = smov [#allocation13]  }
 0x120   :  { %992 = vmatprep.subr.mxu1 %v1207_v0  ;;  %v475_v38 = vcombine.high %v467_v36, %v467_v36  ;;  %v483_v40 = vrot.slane %v467_v36, %v466_v35  ;;  %v474_v43 = vrot.slane %v460_v37, %v466_v35  ;;  %s868_s2 = sshll.u32 %s1210_s11, 4  ;;  %s869_s2 = int_to_ptr.vmem [resolvable:$true] %s868_s2 }
 0x121   :  { %993 = vmatpush3.msra.mxu1 %v375_v22  ;;  %v891_v22 = vld [vmem:[#allocation10] ss:$0 sm:$0xff]  ;;  %s1169_s23 = scalar_lea.vmem %s869_s2, 128  ;;  %p1174_p3 = scmp.lt.s32.totalorder %s869_s2, %s869_s2 }
 0x122   :  { %995 = vmatmul.mubr.msk.f32.vlgmr.msra.gmra.mxu1 %vm135_vm1, %v374_v23  ;;  %v497_v44 = vrot.slane %v475_v38, %v466_v35  ;;  %v505_v46 = vcombine.high %v483_v40, %v483_v40  ;;  %v476_v48 = vcombine.high %v474_v43, %v474_v43  ;;  %v490_v49 = vrot.slane %v474_v43, %v466_v35  ;;  %p1170_p2 = scmp.ne.s32.totalorder %s869_s2, %s1169_s23  ;;  %p1175_p4 = scmp.lt.s32.totalorder %s1169_s23, %s1169_s23 }
 0x123   :  { %v512_v52 = vrot.slane %v483_v40, %v511_v47  ;;  %1017 = vmatprep.subr.mxu1 %v716_v18 }
 0x124   :  { %v507_v50 = vcombine.high %v497_v44, %v497_v44  ;;  %v516_v53 = vrot.slane %v497_v44, %v511_v47  ;;  %v520_v54 = vrot.slane %v505_v46, %v511_v47  ;;  %v504_v57 = vrot.slane %v476_v48, %v466_v35  ;;  %1018 = vmatpush3.msra.mxu1 %v716_v18  ;;  %p1176_p5 = por %p1175_p4, %p1174_p3 }
 0x125   :  { %v506_v58 = vcombine.high %v490_v49, %v490_v49  ;;  %v528_v61 = vrot.slane %v490_v49, %v511_v47  ;;  %1019 = vmatprep.subr.mxu1 %v715_v19 }
 0x126   :  { %v524_v59 = vrot.slane %v507_v50, %v511_v47  ;;  %v508_v3 = vcombine.high %v504_v57, %v504_v57  ;;  %v532_v4 = vrot.slane %v504_v57, %v511_v47  ;;  %1020 = vmatpush3.msra.mxu1 %v715_v19  ;;  %p1177_p6 = pnand %p1176_p5, %p1170_p2 }
 0x127   :  { %v536_v6 = vrot.slane %v506_v58, %v511_v47  ;;  %1021 = vmatprep.subr.mxu1 %v714_v20 }
 0x128   :  { %v540_v11 = vrot.slane %v508_v3, %v511_v47  ;;  %1022 = vmatpush3.msra.mxu1 %v714_v20 }
 0x129   :  { %1023 = vmatprep.subr.mxu1 %v713_v21 }
 0x12a   :  { %1024 = vmatpush3.msra.mxu1 %v713_v21 }
 0x1da   :  { %v290_v41 = vpop.f32.mrf.mxu1 }
 0x1db   :  { %v291_v42 = vadd.f32 %v886_v39, %v290_v41 }
 0x1dc   :  { %v974_v45 = vpop.f32.mrf.mxu1 }
 0x1dd   :  { %295 = vst.msk [vmem:[#allocation13] sm:$0xff] %vm294_vm2, %v291_v42 }
 0x1e2   :  { %v455_v55 = vpop.f32.mrf.mxu1 }
 0x1e3   :  { %v456_v56 = vadd.f32 %v889_v51, %v455_v55 }
 0x1e4   :  { %v996_v60 = vpop.f32.mrf.mxu1 }
 0x1e5   :  { %v549_v62 = vadd.f32 %v512_v52, %v456_v56  ;;  %v550_v63 = vadd.f32 %v516_v53, %v456_v56  ;;  %v551_v0 = vadd.f32 %v520_v54, %v456_v56  ;;  %v552_v5 = vadd.f32 %v524_v59, %v456_v56 }
 0x1e6   :  { %v553_v8 = vadd.f32 %v528_v61, %v456_v56  ;;  %v554_v10 = vadd.f32 %v532_v4, %v456_v56  ;;  %v555_v13 = vadd.f32 %v536_v6, %v456_v56  ;;  %v556_v15 = vadd.f32 %v540_v11, %v456_v56 }
 0x1e7   :  { %v557_v1 = vmax.f32 %v549_v62, 0.0  ;;  %v558_v2 = vmax.f32 %v550_v63, 0.0  ;;  %v559_v7 = vmax.f32 %v551_v0, 0.0  ;;  %v560_v9 = vmax.f32 %v552_v5, 0.0 }
 0x1e8   :  { %v561_v12 = vmax.f32 %v553_v8, 0.0  ;;  %v562_v14 = vmax.f32 %v554_v10, 0.0  ;;  %v563_v16 = vmax.f32 %v555_v13, 0.0  ;;  %v564_v17 = vmax.f32 %v556_v15, 0.0 }
 0x1e9   :  { %1005 = vmatprep.mubr.msk.f32.mxu0 %vm135_vm1, %v557_v1 }
 0x1ea   :  { %1006 = vmatmul.mubr.msk.f32.vlgmr.msra.gmra.mxu0 %vm135_vm1, %v558_v2 }
 0x1eb   :  { %1008 = vmatprep.mubr.msk.f32.mxu0 %vm135_vm1, %v559_v7 }
 0x1ee   :  { %1009 = vmatmul.mubr.msk.f32.gmra.mxu0 %vm135_vm1, %v560_v9 }
 0x1ef   :  { %1011 = vmatprep.mubr.msk.f32.mxu0 %vm135_vm1, %v561_v12 }
 0x1f2   :  { %1012 = vmatmul.mubr.msk.f32.gmra.mxu0 %vm135_vm1, %v562_v14 }
 0x1f3   :  { %1014 = vmatprep.mubr.msk.f32.mxu0 %vm135_vm1, %v563_v16 }
 0x1f6   :  { %1015 = vmatmul.mubr.msk.f32.gmra.mxu0 %vm135_vm1, %v564_v17 }
 0x2aa   :  { %v1007_v23 = vpop.f32.mrf.mxu0 }
 0x2ab   :  { %v672_v24 = vadd.f32 %v1007_v23, %v891_v22 }
 0x2ac   :  { %v666_v25 = vpop.f32.mrf.mxu0 }
 0x2ad   :  { %v667_v26 = vadd.f32 %v891_v22, %v666_v25  ;;  %v706_v29 = vmax.f32 %v672_v24, 0.0 }
 0x2ae   :  { %v1010_v27 = vpop.f32.mrf.mxu0 }
 0x2af   :  { %v705_v28 = vmax.f32 %v667_v26, 0.0  ;;  %v682_v30 = vadd.f32 %v1010_v27, %v891_v22 }
 0x2b0   :  { %v676_v31 = vpop.f32.mrf.mxu0 }
 0x2b1   :  { %v677_v32 = vadd.f32 %v891_v22, %v676_v31  ;;  %1025 = vmatprep.mubr.msk.f32.mxu1 %vm135_vm1, %v705_v28  ;;  %v708_v35 = vmax.f32 %v682_v30, 0.0 }
 0x2b2   :  { %v1013_v33 = vpop.f32.mrf.mxu0  ;;  %1026 = vmatmul.mubr.msk.f32.vlgmr.msra.gmra.mxu1 %vm135_vm1, %v706_v29 }
 0x2b3   :  { %v707_v34 = vmax.f32 %v677_v32, 0.0  ;;  %v692_v36 = vadd.f32 %v1013_v33, %v891_v22 }
 0x2b4   :  { %v686_v37 = vpop.f32.mrf.mxu0 }
 0x2b5   :  { %v687_v38 = vadd.f32 %v891_v22, %v686_v37  ;;  %1028 = vmatprep.mubr.msk.f32.mxu1 %vm135_vm1, %v707_v34  ;;  %v710_v41 = vmax.f32 %v692_v36, 0.0 }
 0x2b6   :  { %v1016_v39 = vpop.f32.mrf.mxu0  ;;  %1029 = vmatmul.mubr.msk.f32.gmra.mxu1 %vm135_vm1, %v708_v35 }
 0x2b7   :  { %v709_v40 = vmax.f32 %v687_v38, 0.0  ;;  %v702_v42 = vadd.f32 %v1016_v39, %v891_v22 }
 0x2b8   :  { %v696_v43 = vpop.f32.mrf.mxu0 }
 0x2b9   :  { %v697_v44 = vadd.f32 %v891_v22, %v696_v43  ;;  %1031 = vmatprep.mubr.msk.f32.mxu1 %vm135_vm1, %v709_v40  ;;  %v712_v46 = vmax.f32 %v702_v42, 0.0 }
 0x2ba   :  { %1032 = vmatmul.mubr.msk.f32.gmra.mxu1 %vm135_vm1, %v710_v41 }
 0x2bb   :  { %v711_v45 = vmax.f32 %v697_v44, 0.0 }
 0x2bd   :  { %1034 = vmatprep.mubr.msk.f32.mxu1 %vm135_vm1, %v711_v45 }
 0x2be   :  { %1035 = vmatmul.mubr.msk.f32.gmra.mxu1 %vm135_vm1, %v712_v46 }
 0x2bf   :  { %1180 = shalt.err (!%p1177_p6)
}
 0x2c0   :  { %871 = dma.vmem_to_hbm [thread:$0]  %s869_s2, 128, %s1442_s13, [#allocation4]   ;;  %v900_v47 = vld [vmem:[#allocation11] ss:$0 sm:$0xff]  ;;  %vm853_vm3 = vcmask 39936  }
 0x372   :  { %v1027_v48 = vpop.f32.mrf.mxu1 }
 0x373   :  { %v820_v49 = vadd.f32 %v1027_v48, %v900_v47 }
 0x374   :  { %v814_v50 = vpop.f32.mrf.mxu1 }
 0x375   :  { %855 = vst.msk [vmem:[%s1443_s14 + $0x8] sm:$0xff] %vm853_vm3, %v820_v49  ;;  %v815_v51 = vadd.f32 %v900_v47, %v814_v50 }
 0x376   :  { %v1030_v52 = vpop.f32.mrf.mxu1 }
 0x377   :  { %854 = vst.msk [vmem:[%s1443_s14] sm:$0xff] %vm853_vm3, %v815_v51  ;;  %v830_v53 = vadd.f32 %v1030_v52, %v900_v47 }
 0x378   :  { %v824_v54 = vpop.f32.mrf.mxu1 }
 0x379   :  { %857 = vst.msk [vmem:[%s1443_s14 + $0x18] sm:$0xff] %vm853_vm3, %v830_v53  ;;  %v825_v55 = vadd.f32 %v900_v47, %v824_v54 }
 0x37a   :  { %v1033_v56 = vpop.f32.mrf.mxu1 }
 0x37b   :  { %856 = vst.msk [vmem:[%s1443_s14 + $0x10] sm:$0xff] %vm853_vm3, %v825_v55  ;;  %v840_v57 = vadd.f32 %v1033_v56, %v900_v47 }
 0x37c   :  { %v834_v58 = vpop.f32.mrf.mxu1 }
 0x37d   :  { %859 = vst.msk [vmem:[%s1443_s14 + $0x28] sm:$0xff] %vm853_vm3, %v840_v57  ;;  %v835_v59 = vadd.f32 %v900_v47, %v834_v58 }
 0x37e   :  { %v1036_v60 = vpop.f32.mrf.mxu1 }
 0x37f   :  { %858 = vst.msk [vmem:[%s1443_s14 + $0x20] sm:$0xff] %vm853_vm3, %v835_v59  ;;  %v850_v61 = vadd.f32 %v1036_v60, %v900_v47 }
 0x380   :  { %v844_v62 = vpop.f32.mrf.mxu1 }
 0x381   :  { %861 = vst.msk [vmem:[%s1443_s14 + $0x38] sm:$0xff] %vm853_vm3, %v850_v61  ;;  %v845_v63 = vadd.f32 %v900_v47, %v844_v62 }
 0x383   :  { %860 = vst.msk [vmem:[%s1443_s14 + $0x30] sm:$0xff] %vm853_vm3, %v845_v63 }
 0x384   :  { %1197 = dma.done.wait [#allocation4], 128  }
 0x385   :  { %1198 = vsyncadd [#allocation4], 4294967168 }
 0x386   :  { %879 = vsyncpa [#allocation3], 1 }
 0x387   :  { %880 = vsyncpa [#allocation6], 1 }
 0x388   :  { %881 = vsyncpa [#allocation9], 1 }
 0x389   :  { %882 = vsyncpa [#allocation12], 1 }
 0x38a   :  { %883 = vsyncpa [#allocation4], 1 }

</bundles_post_ra>
